<compile_context>
chip_gen: v7x
topology: tpu7x:2x2x1
jax: 0.10.0
libtpu: 0.0.40
codegen_flags: <defaults>
</compile_context>

<pallas_src>
import functools

import jax
import jax.numpy as jnp
from jax.experimental import pallas as pl
from jax.experimental.pallas import tpu as pltpu


_MAX_BLOCK_BYTES = 4 * 1024 * 1024  # per-block budget; fits all generations


def _choose_lane_tile(hw, row_bytes, max_block_bytes=_MAX_BLOCK_BYTES):
    """Largest T dividing hw with T % 128 == 0 (unmasked, lane-dense stores)
    and T * row_bytes <= budget.  Falls back to the full extent when hw is not
    128-aligned (BlockSpec rule: last dim divisible by 128 OR full)."""
    if hw % 128 != 0:
        return hw
    best = None
    t = 128
    while t <= hw:
        if hw % t == 0 and t * row_bytes <= max_block_bytes:
            best = t
        t += 128
    return best if best is not None else 128


# ---------------------------------------------------------------------------
# Pass 1: tiled global average pool + fc1/relu/fc2/sigmoid/threshold -> y (B,C)
# ---------------------------------------------------------------------------
def _squeeze_kernel(x_ref, w1t_ref, b1_ref, w2t_ref, b2_ref, y_ref, acc_ref,
                    *, inv_hw):
    j = pl.program_id(0)

    @pl.when(j == 0)
    def _():
        acc_ref[...] = jnp.zeros_like(acc_ref)

    # Partial spatial sum of this HW tile: (B, C, T) -> (B, C)
    acc_ref[...] += jnp.sum(x_ref[...].astype(jnp.float32), axis=2)

    @pl.when(j == pl.num_programs(0) - 1)
    def _():
        pooled = acc_ref[...] * inv_hw                                # (B, C)
        # fc1: (B, C) @ (C, Hd) + b1  (lane-dense, batched over B)
        h = jnp.dot(pooled, w1t_ref[...],
                    preferred_element_type=jnp.float32) + b1_ref[...]
        h = jnp.maximum(h, 0.0)                                       # ReLU
        # fc2: (B, Hd) @ (Hd, C) + b2, then sigmoid
        s = jnp.dot(h, w2t_ref[...],
                    preferred_element_type=jnp.float32) + b2_ref[...]
        s = jax.nn.sigmoid(s)                                         # (B, C)
        # threshold: y[y < 0.3] = 0
        y_ref[...] = jnp.where(s >= 0.3, s, 0.0).astype(y_ref.dtype)


# ---------------------------------------------------------------------------
# Pass 2: per (batch, HW-tile): in1 = y*x, 1x1 convs, thresholds, t*in1
# ---------------------------------------------------------------------------
def _excite_kernel(x_ref, y_ref, cw1_ref, cb1_ref, cw2_ref, cb2_ref, out_ref):
    x = x_ref[...].astype(jnp.float32)          # (C, T)
    y = y_ref[...].astype(jnp.float32)          # (C, 1) broadcasts over lanes

    in1 = y * x                                 # channel re-weighting

    # conv1 (1x1): (Hd1, C) @ (C, T) + bias, ReLU
    z1 = jnp.dot(cw1_ref[...], in1,
                 preferred_element_type=jnp.float32) + cb1_ref[...]
    z1 = jnp.maximum(z1, 0.0)

    # conv2 (1x1): (C, Hd1) @ (Hd1, T) + bias, sigmoid
    z2 = jnp.dot(cw2_ref[...], z1,
                 preferred_element_type=jnp.float32) + cb2_ref[...]
    t = jax.nn.sigmoid(z2)                      # (C, T)

    # t[t < 0.3] = 0 ; t[y < 0.3] = 0  (single fused compare/select)
    keep = jnp.logical_and(t >= 0.3, y >= 0.3)
    t = jnp.where(keep, t, 0.0)

    out_ref[...] = (t * in1).astype(out_ref.dtype)


def se_block3_forward(x, params):
    """x: (B, C, H, W) float32; params as produced by init_params."""
    w1, b1, w2, b2, cw1, cb1, cw2, cb2 = params
    B, C, H, W = x.shape
    HW = H * W
    Hd = w1.shape[0]
    Hd1 = cw1.shape[0]

    x2 = x.reshape(B, C, HW)

    # Lane-dense parameter layouts (tiny one-time XLA-side reshapes).
    w1t = w1.T                      # (C, Hd)
    w2t = w2.T                      # (Hd, C)
    b1r = b1.reshape(1, Hd)
    b2r = b2.reshape(1, C)
    cb1c = cb1.reshape(Hd1, 1)
    cb2c = cb2.reshape(C, 1)

    full2 = lambda j: (0, 0)

    # ---- Pass 1: y = threshold(sigmoid(fc2(relu(fc1(avgpool(x)))))) ----
    tp = _choose_lane_tile(HW, B * C * 4)
    y = pl.pallas_call(
        functools.partial(_squeeze_kernel, inv_hw=1.0 / HW),
        out_shape=jax.ShapeDtypeStruct((B, C), jnp.float32),
        grid=(HW // tp,),
        in_specs=[
            pl.BlockSpec((B, C, tp), lambda j: (0, 0, j)),   # x tile
            pl.BlockSpec((C, Hd), full2),                    # fc1 weight^T
            pl.BlockSpec((1, Hd), full2),                    # fc1 bias (row)
            pl.BlockSpec((Hd, C), full2),                    # fc2 weight^T
            pl.BlockSpec((1, C), full2),                     # fc2 bias (row)
        ],
        out_specs=pl.BlockSpec((B, C), full2),
        scratch_shapes=[pltpu.VMEM((B, C), jnp.float32)],    # pooled-sum acc
        compiler_params=pltpu.CompilerParams(
            dimension_semantics=("arbitrary",)),
    )(x2, w1t, b1r, w2t, b2r)

    # ---- Pass 2: excite / 1x1 convs / thresholds / final multiply ----
    t2 = _choose_lane_tile(HW, C * 4)
    y3 = y.reshape(B, C, 1)
    full2b = lambda b, j: (0, 0)
    out = pl.pallas_call(
        _excite_kernel,
        out_shape=jax.ShapeDtypeStruct((B, C, HW), x.dtype),
        grid=(B, HW // t2),
        in_specs=[
            pl.BlockSpec((None, C, t2), lambda b, j: (b, 0, j)),  # x tile
            pl.BlockSpec((None, C, 1), lambda b, j: (b, 0, 0)),   # y column
            pl.BlockSpec((Hd1, C), full2b),                       # conv1 w
            pl.BlockSpec((Hd1, 1), full2b),                       # conv1 b
            pl.BlockSpec((C, Hd1), full2b),                       # conv2 w
            pl.BlockSpec((C, 1), full2b),                         # conv2 b
        ],
        out_specs=pl.BlockSpec((None, C, t2), lambda b, j: (b, 0, j)),
        compiler_params=pltpu.CompilerParams(
            dimension_semantics=("parallel", "parallel"),
            vmem_limit_bytes=48 * 1024 * 1024),
    )(x2, y3, cw1, cb1c, cw2, cb2c)

    return out.reshape(B, C, H, W)


def reference_forward(x, params):
    """Pure-JAX reference mirroring the PyTorch forward (for verification)."""
    w1, b1, w2, b2, cw1, cb1, cw2, cb2 = params
    pooled = x.mean(axis=(2, 3))                                 # (B, C)
    h = jnp.maximum(pooled @ w1.T + b1, 0.0)
    s = jax.nn.sigmoid(h @ w2.T + b2)
    y = jnp.where(s < 0.3, 0.0, s)                               # (B, C)
    in1 = y[:, :, None, None] * x
    z1 = jnp.maximum(jnp.einsum('oc,bchw->bohw', cw1, in1)
                     + cb1[None, :, None, None], 0.0)
    z2 = jnp.einsum('co,bohw->bchw', cw2, z1) + cb2[None, :, None, None]
    t = jax.nn.sigmoid(z2)
    t = jnp.where(t < 0.3, 0.0, t)
    t = jnp.where((y < 0.3)[:, :, None, None], 0.0, t)
    return t * in1


def init_params(key, n_channels, ratio):
    """Deterministic synthetic parameters with PyTorch-default-like scales."""
    hidden = n_channels // ratio
    ks = jax.random.split(key, 8)

    def u(k, shape, fan_in):
        bound = 1.0 / jnp.sqrt(jnp.float32(fan_in))
        return jax.random.uniform(k, shape, jnp.float32, -bound, bound)

    w1 = u(ks[0], (hidden, n_channels), n_channels)    # fc1.weight
    b1 = u(ks[1], (hidden,), n_channels)               # fc1.bias
    w2 = u(ks[2], (n_channels, hidden), hidden)        # fc2.weight
    b2 = u(ks[3], (n_channels,), hidden)               # fc2.bias
    cw1 = u(ks[4], (hidden, n_channels), n_channels)   # conv1.weight (1x1)
    cb1 = u(ks[5], (hidden,), n_channels)              # conv1.bias
    cw2 = u(ks[6], (n_channels, hidden), hidden)       # conv2.weight (1x1)
    cb2 = u(ks[7], (n_channels,), hidden)              # conv2.bias
    return (w1, b1, w2, b2, cw1, cb1, cw2, cb2)


if __name__ == "__main__":
    # Small shapes consistent with the module (n_channels >= ratio); HW = 256
    # so the excite pass stores >= 2*128 contiguous lanes (unmasked vst).
    B, C, H, W = 2, 32, 16, 16
    RATIO = 16

    key = jax.random.PRNGKey(0)
    kx, kp = jax.random.split(key)
    x = jax.random.normal(kx, (B, C, H, W), dtype=jnp.float32)
    params = init_params(kp, C, RATIO)

    out = se_block3_forward(x, params)
    out = jax.block_until_ready(out)

    ref = reference_forward(x, params)
    assert out.shape == (B, C, H, W)
    assert jnp.allclose(out, ref, atol=1e-5, rtol=1e-5)

    print("KERNEL_OK")
</pallas_src>

<mosaic_0001>
module attributes {stable_mosaic.version = 11 : i64} {
  func.func @_squeeze_kernel(%arg0: i32, %arg1: memref<2x32x256xf32, #tpu.memory_space<vmem>>, %arg2: memref<32x2xf32, #tpu.memory_space<vmem>>, %arg3: memref<1x2xf32, #tpu.memory_space<vmem>>, %arg4: memref<2x32xf32, #tpu.memory_space<vmem>>, %arg5: memref<1x32xf32, #tpu.memory_space<vmem>>, %arg6: memref<2x32xf32, #tpu.memory_space<vmem>>, %arg7: memref<2x32xf32, #tpu.memory_space<vmem>>) attributes {dimension_semantics = [#tpu.dimension_semantics<arbitrary>], iteration_bounds = array<i64: 1>, scalar_prefetch = 0 : i64, scratch_operands = 1 : i64, tpu.core_type = #tpu.core_type<tc>, window_params = [{transform_indices = @transform_0, window_bounds = array<i64: 2, 32, 256>}, {pipeline_mode = #tpu.pipeline_mode<synchronous>, transform_indices = @transform_1, window_bounds = array<i64: 32, 2>}, {pipeline_mode = #tpu.pipeline_mode<synchronous>, transform_indices = @transform_2, window_bounds = array<i64: 1, 2>}, {pipeline_mode = #tpu.pipeline_mode<synchronous>, transform_indices = @transform_3, window_bounds = array<i64: 2, 32>}, {pipeline_mode = #tpu.pipeline_mode<synchronous>, transform_indices = @transform_4, window_bounds = array<i64: 1, 32>}, {pipeline_mode = #tpu.pipeline_mode<synchronous>, transform_indices = @transform_5, window_bounds = array<i64: 2, 32>}]} {
    %c0_i32 = arith.constant 0 : i32
    %0 = arith.cmpi eq, %arg0, %c0_i32 : i32
    %1 = arith.extui %0 : i1 to i32
    %c0_i32_0 = arith.constant 0 : i32
    %2 = arith.cmpi ne, %1, %c0_i32_0 : i32
    scf.if %2 {
      %cst_9 = arith.constant 0.000000e+00 : f32
      %11 = vector.broadcast %cst_9 : f32 to vector<2x32xf32>
      %c0_10 = arith.constant 0 : index
      %c0_11 = arith.constant 0 : index
      %12 = vector.load %arg7[%c0_10, %c0_11] : memref<2x32xf32, #tpu.memory_space<vmem>>, vector<2x32xf32>
      tpu.vector_store %arg7[%c0_10, %c0_11], %11 {strides = array<i32>} : memref<2x32xf32, #tpu.memory_space<vmem>>, vector<2x32xf32>,
    } else {
    }
    %c0 = arith.constant 0 : index
    %c0_1 = arith.constant 0 : index
    %3 = vector.load %arg7[%c0, %c0_1] : memref<2x32xf32, #tpu.memory_space<vmem>>, vector<2x32xf32>
    %c0_2 = arith.constant 0 : index
    %c0_3 = arith.constant 0 : index
    %c0_4 = arith.constant 0 : index
    %4 = vector.load %arg1[%c0_2, %c0_3, %c0_4] : memref<2x32x256xf32, #tpu.memory_space<vmem>>, vector<2x32x256xf32>
    %cst = arith.constant dense<0.000000e+00> : vector<2x32xf32>
    %5 = vector.multi_reduction <add>, %4, %cst [2] : vector<2x32x256xf32> to vector<2x32xf32>
    %6 = arith.addf %3, %5 : vector<2x32xf32>
    %c0_5 = arith.constant 0 : index
    %c0_6 = arith.constant 0 : index
    %7 = vector.load %arg7[%c0_5, %c0_6] : memref<2x32xf32, #tpu.memory_space<vmem>>, vector<2x32xf32>
    tpu.vector_store %arg7[%c0_5, %c0_6], %6 {strides = array<i32>} : memref<2x32xf32, #tpu.memory_space<vmem>>, vector<2x32xf32>,
    %c0_i32_7 = arith.constant 0 : i32
    %8 = arith.cmpi eq, %arg0, %c0_i32_7 : i32
    %9 = arith.extui %8 : i1 to i32
    %c0_i32_8 = arith.constant 0 : i32
    %10 = arith.cmpi ne, %9, %c0_i32_8 : i32
    scf.if %10 {
      %c0_9 = arith.constant 0 : index
      %c0_10 = arith.constant 0 : index
      %11 = vector.load %arg7[%c0_9, %c0_10] : memref<2x32xf32, #tpu.memory_space<vmem>>, vector<2x32xf32>
      %cst_11 = arith.constant 3.906250e-03 : f32
      %12 = vector.broadcast %cst_11 : f32 to vector<2x32xf32>
      %13 = arith.mulf %11, %12 : vector<2x32xf32>
      %c0_12 = arith.constant 0 : index
      %c0_13 = arith.constant 0 : index
      %14 = vector.load %arg2[%c0_12, %c0_13] : memref<32x2xf32, #tpu.memory_space<vmem>>, vector<32x2xf32>
      %cst_14 = arith.constant dense<0.000000e+00> : vector<2x2xf32>
      %15 = tpu.matmul %13, %14, %cst_14 {dimension_numbers = #tpu.dot_dimension_numbers<[1], [0], [0], [1], [0, 0, 1, 1], [], []>} : vector<2x32xf32>, vector<32x2xf32>, vector<2x2xf32> -> vector<2x2xf32>
      %c0_15 = arith.constant 0 : index
      %c0_16 = arith.constant 0 : index
      %16 = vector.load %arg3[%c0_15, %c0_16] : memref<1x2xf32, #tpu.memory_space<vmem>>, vector<1x2xf32>
      %17 = vector.broadcast %16 : vector<1x2xf32> to vector<2x2xf32>
      %18 = arith.addf %15, %17 : vector<2x2xf32>
      %cst_17 = arith.constant 0.000000e+00 : f32
      %19 = vector.broadcast %cst_17 : f32 to vector<2x2xf32>
      %20 = arith.maximumf %18, %19 : vector<2x2xf32>
      %c0_18 = arith.constant 0 : index
      %c0_19 = arith.constant 0 : index
      %21 = vector.load %arg4[%c0_18, %c0_19] : memref<2x32xf32, #tpu.memory_space<vmem>>, vector<2x32xf32>
      %cst_20 = arith.constant dense<0.000000e+00> : vector<2x32xf32>
      %22 = tpu.matmul %20, %21, %cst_20 {dimension_numbers = #tpu.dot_dimension_numbers<[1], [0], [0], [1], [0, 0, 1, 1], [], []>} : vector<2x2xf32>, vector<2x32xf32>, vector<2x32xf32> -> vector<2x32xf32>
      %c0_21 = arith.constant 0 : index
      %c0_22 = arith.constant 0 : index
      %23 = vector.load %arg5[%c0_21, %c0_22] : memref<1x32xf32, #tpu.memory_space<vmem>>, vector<1x32xf32>
      %24 = vector.broadcast %23 : vector<1x32xf32> to vector<2x32xf32>
      %25 = arith.addf %22, %24 : vector<2x32xf32>
      %26 = arith.negf %25 : vector<2x32xf32>
      %27 = math.exp %26 : vector<2x32xf32>
      %cst_23 = arith.constant 1.000000e+00 : f32
      %28 = vector.broadcast %cst_23 : f32 to vector<2x32xf32>
      %29 = arith.addf %28, %27 : vector<2x32xf32>
      %30 = arith.divf %28, %29 : vector<2x32xf32>
      %cst_24 = arith.constant 3.000000e-01 : f32
      %31 = vector.broadcast %cst_24 : f32 to vector<2x32xf32>
      %32 = arith.cmpf oge, %30, %31 : vector<2x32xf32>
      %cst_25 = arith.constant 0.000000e+00 : f32
      %33 = vector.broadcast %cst_25 : f32 to vector<2x32xf32>
      %34 = arith.select %32, %30, %33 : vector<2x32xi1>, vector<2x32xf32>
      %c0_26 = arith.constant 0 : index
      %c0_27 = arith.constant 0 : index
      %35 = vector.load %arg6[%c0_26, %c0_27] : memref<2x32xf32, #tpu.memory_space<vmem>>, vector<2x32xf32>
      tpu.vector_store %arg6[%c0_26, %c0_27], %34 {strides = array<i32>} : memref<2x32xf32, #tpu.memory_space<vmem>>, vector<2x32xf32>,
    } else {
    }
    return
  }
  func.func @transform_0(%arg0: i32) -> (i32, i32, i32) {
    %c0_i32 = arith.constant 0 : i32
    %c0_i32_0 = arith.constant 0 : i32
    %c0_i32_1 = arith.constant 0 : i32
    return %c0_i32, %c0_i32_0, %arg0 : i32, i32, i32
  }
  func.func @transform_1(%arg0: i32) -> (i32, i32) {
    %c0_i32 = arith.constant 0 : i32
    %c0_i32_0 = arith.constant 0 : i32
    %c0_i32_1 = arith.constant 0 : i32
    return %c0_i32, %c0_i32_0 : i32, i32
  }
  func.func @transform_2(%arg0: i32) -> (i32, i32) {
    %c0_i32 = arith.constant 0 : i32
    %c0_i32_0 = arith.constant 0 : i32
    %c0_i32_1 = arith.constant 0 : i32
    return %c0_i32, %c0_i32_0 : i32, i32
  }
  func.func @transform_3(%arg0: i32) -> (i32, i32) {
    %c0_i32 = arith.constant 0 : i32
    %c0_i32_0 = arith.constant 0 : i32
    %c0_i32_1 = arith.constant 0 : i32
    return %c0_i32, %c0_i32_0 : i32, i32
  }
  func.func @transform_4(%arg0: i32) -> (i32, i32) {
    %c0_i32 = arith.constant 0 : i32
    %c0_i32_0 = arith.constant 0 : i32
    %c0_i32_1 = arith.constant 0 : i32
    return %c0_i32, %c0_i32_0 : i32, i32
  }
  func.func @transform_5(%arg0: i32) -> (i32, i32) {
    %c0_i32 = arith.constant 0 : i32
    %c0_i32_0 = arith.constant 0 : i32
    %c0_i32_1 = arith.constant 0 : i32
    return %c0_i32, %c0_i32_0 : i32, i32
  }
}

</mosaic_0001>

<bundles_post_ra>
// kernel: tpu_custom_call.1
= control target key start
LH: loop header
LB: loop body
LE: loop exit
PB: predicated region body
PF: predicated region fallthrough
CT: control target
= control target key end

     0   :  { %10 = vsyncpa [#allocation4], 0  ;;  %s522_s0 = inlined_call_operand.hbm [shape: f32[2,32,256], index: 0, kind: input, shape index: {}]   ;;  %s523_s1 = inlined_call_operand.vmem [shape: f32[32,2], index: 1, kind: input, shape index: {}]   ;;  %s524_s2 = inlined_call_operand.vmem [shape: f32[1,2], index: 2, kind: input, shape index: {}]   ;;  %s525_s3 = inlined_call_operand.vmem [shape: f32[2,32], index: 3, kind: input, shape index: {}]   ;;  %s526_s4 = inlined_call_operand.vmem [shape: f32[1,32], index: 4, kind: input, shape index: {}]   ;;  %s527_s5 = inlined_call_operand.hbm [shape: f32[2,32], index: 5, kind: output, shape index: {}]  }
   0x1   :  { %11 = vsyncpa [#allocation5], 0  ;;  %s437_s18 = smov [#allocation3]   ;;  %s389_s22 = scalar_lea.hbm %s522_s0, 2048 }
   0x2   :  { %s17_s19 = sshll.u32 %s437_s18, 4  ;;  %p390_p0 = scmp.ne.s32.totalorder %s522_s0, %s389_s22  ;;  %s18_s19 = int_to_ptr.vmem [resolvable:$true] %s17_s19 }
   0x3   :  { %p393_p1 = scmp.lt.u32.totalorder %s389_s22, %s522_s0 }
   0x5   :  { %p395_p2 = pnand %p393_p1, %p390_p0 }
   0x7   :  { %398 = shalt.err (!%p395_p2)
}
   0x8   :  { %s399_s27 = scalar_lea.vmem %s18_s19, 2048  ;;  %p404_p4 = scmp.lt.s32.totalorder %s18_s19, %s18_s19 }
   0x9   :  { %p400_p3 = scmp.ne.s32.totalorder %s18_s19, %s399_s27  ;;  %p405_p5 = scmp.lt.s32.totalorder %s399_s27, %s399_s27 }
   0xb   :  { %p406_p6 = por %p405_p5, %p404_p4 }
   0xd   :  { %p407_p7 = pnand %p406_p6, %p400_p3 }
   0xf   :  { %410 = shalt.err (!%p407_p7)
}
  0x10   :  { %s438_s28 = smov 256   ;;  %s439_s29 = smov 16  }
  0x11   :  { %23 = dma.hbm_to_vmem [thread:$0]  %s522_s0, 2048, %s18_s19, [#allocation4], %s438_s28, %s438_s28, %s439_s29  }
  0x12   :  { %433 = dma.done.wait [#allocation4], 2048  }
  0x13   :  { %434 = vsyncadd [#allocation4], 4294965248  ;;  %v50_v0 = vld [vmem:[#allocation3 + $0x40] sm:$0xff]  ;;  %v51_v1 = vld [vmem:[#allocation3 + $0x48] sm:$0xff]  ;;  %vm39_vm0 = vcmask 254976   ;;  %v440_v24 = vmov 0.0   ;;  %v90_v32 = vlaneseq }
  0x14   :  { %v42_v2 = vld [vmem:[#allocation3] sm:$0xff]  ;;  %v70_v3 = vadd.f32 %v51_v1, %v50_v0  ;;  %v43_v4 = vld [vmem:[#allocation3 + $0x8] sm:$0xff]  ;;  %v52_v5 = vld [vmem:[#allocation3 + $0x50] sm:$0xff]  ;;  %40 = vst.msk [vmem:[#allocation2] sm:$0x3] %vm39_vm0, %v440_v24  ;;  %367 = vmatprep.subr.mxu1 %v440_v24  ;;  %v441_v28 = vmov 0.0|0.0  }
  0x15   :  { %v53_v6 = vld [vmem:[#allocation3 + $0x58] sm:$0xff]  ;;  %v58_v7 = vadd.f32 %v43_v4, %v42_v2  ;;  %v44_v8 = vld [vmem:[#allocation3 + $0x10] sm:$0xff]  ;;  %v54_v12 = vld [vmem:[#allocation3 + $0x60] sm:$0xff]  ;;  %372 = vmatprep.subr.bf16.mxu0 %v441_v28  ;;  %vm442_vm1 = vmmov 0   ;;  %v91_v33 = vand.u32 127, %v90_v32  ;;  %v93_v38 = vshrl.u32 %v90_v32, 7 }
  0x16   :  { %v45_v9 = vld [vmem:[#allocation3 + $0x18] sm:$0xff]  ;;  %71 = vadd.xlane.f32.xlu1 %v70_v3  ;;  %v73_v10 = vadd.f32 %v53_v6, %v52_v5  ;;  %v55_v13 = vld [vmem:[#allocation3 + $0x68] sm:$0xff]  ;;  %v46_v14 = vld [vmem:[#allocation3 + $0x20] sm:$0xff]  ;;  %364 = vmatprep.mubr.msk.f32.mxu0 %vm442_vm1, %v440_v24  ;;  %vm101_vm2 = vcmask 130112   ;;  %vm108_vm3 = vcmask 195712   ;;  %vm115_vm4 = vcmask 261312  }
  0x17   :  { %59 = vadd.xlane.f32.xlu0 %v58_v7  ;;  %v61_v11 = vadd.f32 %v45_v9, %v44_v8  ;;  %v47_v15 = vld [vmem:[#allocation3 + $0x28] sm:$0xff]  ;;  %v76_v16 = vadd.f32 %v55_v13, %v54_v12  ;;  %v56_v18 = vld [vmem:[#allocation3 + $0x70] sm:$0xff]  ;;  %v57_v19 = vld [vmem:[#allocation3 + $0x78] sm:$0xff]  ;;  %369 = vmatprep.mubr.msk.f32.mxu1 %vm442_vm1, %v440_v24  ;;  %v96_v36 = vadd.s32 4294967288, %v91_v33  ;;  %v103_v37 = vadd.s32 4294967280, %v91_v33 }
  0x18   :  { %v64_v17 = vadd.f32 %v47_v15, %v46_v14  ;;  %v48_v20 = vld [vmem:[#allocation3 + $0x30] sm:$0xff]  ;;  %v49_v21 = vld [vmem:[#allocation3 + $0x38] sm:$0xff]  ;;  %v79_v22 = vadd.f32 %v57_v19, %v56_v18  ;;  %v148_v26 = vld [vmem:[%s523_s1 + $0x8] sm:$0xff]  ;;  %v110_v42 = vadd.s32 4294967272, %v91_v33  ;;  %v94_v44 = vsub.s32 %v91_v33, %v93_v38 }
  0x19   :  { %v67_v23 = vadd.f32 %v49_v21, %v48_v20  ;;  %v147_v25 = vld [vmem:[%s523_s1] sm:$0xff]  ;;  %v149_v27 = vld [vmem:[%s523_s1 + $0x10] sm:$0xff]  ;;  %v150_v30 = vld [vmem:[%s523_s1 + $0x18] sm:$0xff]  ;;  %v99_v40 = vsub.s32 %v96_v36, %v93_v38  ;;  %v106_v43 = vsub.s32 %v103_v37, %v93_v38  ;;  %vm136_vm5 = vcmask 1041409  }
  0x1a   :  { %74 = vadd.xlane.f32.xlu1 %v73_v10  ;;  %v373_v29 = vpack.c.bf16 %v148_v26, %v147_v25  ;;  %v376_v31 = vpack.c.bf16 %v150_v30, %v149_v27  ;;  %v113_v48 = vsub.s32 %v110_v42, %v93_v38  ;;  %vm158_vm6 = vcmask 261120   ;;  %v233_v5 = vld [vmem:[%s525_s3] sm:$0x3]  ;;  %s443_s3 = smov [#allocation6]  }
  0x1b   :  { %62 = vadd.xlane.f32.xlu0 %v61_v11  ;;  %v41_v63 = vld [vmem:[#allocation2] sm:$0x3]  ;;  %vm245_vm7 = vcmask 1041408   ;;  %vm241_vm8 = vcmask 15360  }
  0x1c   :  { %374 = vmatpush3.bf16.msra.mxu0 %v373_v29  ;;  %368 = vmatpush3.msk.msra.mxu1 %vm245_vm7, %v233_v5  ;;  %v343_v6 = vld [vmem:[%s524_s2] ss:$0 sm:$0xff]  ;;  %s334_s2 = sshll.u32 %s443_s3, 4  ;;  %s335_s2 = int_to_ptr.vmem [resolvable:$true] %s334_s2 }
  0x1d   :  { %375 = vmatprep.subr.bf16.mxu0 %v441_v28  ;;  %v345_v11 = vld [vmem:[%s526_s4] ss:$0 sm:$0xff]  ;;  %s411_s19 = scalar_lea.vmem %s335_s2, 32  ;;  %p416_p9 = scmp.lt.s32.totalorder %s335_s2, %s335_s2 }
  0x1e   :  { %77 = vadd.xlane.f32.xlu1 %v76_v16  ;;  %p412_p8 = scmp.ne.s32.totalorder %s335_s2, %s411_s19  ;;  %p417_p10 = scmp.lt.s32.totalorder %s411_s19, %s411_s19 }
  0x1f   :  { %65 = vadd.xlane.f32.xlu0 %v64_v17 }
  0x20   :  { %377 = vmatpush3.bf16.msra.mxu0 %v376_v31  ;;  %p418_p11 = por %p417_p10, %p416_p9 }
  0x22   :  { %80 = vadd.xlane.f32.xlu1 %v79_v22  ;;  %p419_p12 = pnand %p418_p11, %p412_p8 }
  0x23   :  { %68 = vadd.xlane.f32.xlu0 %v67_v23 }
  0xa3   :  { %v72_v34 = vpop.xlane.xlu1 %71 }
  0xa4   :  { %v60_v35 = vpop.xlane.xlu0 %59  ;;  %v120_v51 = vrot.slane %v72_v34, %v94_v44 }
  0xa5   :  { %v95_v53 = vrot.slane %v60_v35, %v94_v44 }
  0xa7   :  { %v75_v39 = vpop.xlane.xlu1 %74 }
  0xa8   :  { %v63_v41 = vpop.xlane.xlu0 %62  ;;  %v124_v46 = vrot.slane %v75_v39, %v99_v40 }
  0xa9   :  { %v100_v49 = vrot.slane %v63_v41, %v99_v40 }
  0xaa   :  { %v125_v55 = vsel %vm101_vm2, %v124_v46, %v120_v51 }
  0xab   :  { %v78_v45 = vpop.xlane.xlu1 %77  ;;  %v102_v58 = vsel %vm101_vm2, %v100_v49, %v95_v53 }
  0xac   :  { %v66_v47 = vpop.xlane.xlu0 %65  ;;  %v129_v50 = vrot.slane %v78_v45, %v106_v43 }
  0xad   :  { %v107_v52 = vrot.slane %v66_v47, %v106_v43 }
  0xae   :  { %v130_v59 = vsel %vm108_vm3, %v129_v50, %v125_v55 }
  0xaf   :  { %v81_v54 = vpop.xlane.xlu1 %80  ;;  %v109_v61 = vsel %vm108_vm3, %v107_v52, %v102_v58 }
  0xb0   :  { %v134_v56 = vrot.slane %v81_v54, %v113_v48  ;;  %v69_v57 = vpop.xlane.xlu0 %68 }
  0xb1   :  { %v114_v60 = vrot.slane %v69_v57, %v113_v48 }
  0xb2   :  { %v135_v62 = vsel %vm115_vm4, %v134_v56, %v130_v59 }
  0xb3   :  { %v116_v0 = vsel %vm115_vm4, %v114_v60, %v109_v61 }
  0xb4   :  { %v137_v1 = vsel %vm136_vm5, %v135_v62, %v116_v0 }
  0xb5   :  { %v139_v2 = vadd.f32 %v137_v1, %v41_v63 }
  0xb7   :  { %141 = vst.msk [vmem:[#allocation2] sm:$0x3] %vm39_vm0, %v139_v2 }
  0xbe   :  { %v145_v3 = vld [vmem:[#allocation2] sm:$0x3] }
  0xbf   :  { %v146_v4 = vmul.f32 0.00390625, %v145_v3 }
  0xc1   :  { %365 = vmatmul.mubr.msk.f32.vlgmr.msra.gmra.mrb[0].mxu0 %vm158_vm6, %v146_v4 }
 0x194   :  { %v228_v7 = vpop.f32.mrb[0].mxu0 }
 0x195   :  { %v229_v8 = vadd.f32 %v343_v6, %v228_v7  ;;  %v366_v9 = vpop.f32.mrb[1].mxu0 }
 0x197   :  { %v232_v10 = vmax.f32 %v229_v8, 0.0 }
 0x199   :  { %370 = vmatmul.mubr.msk.f32.vlgmr.msra.gmra.mrb[0].mxu1 %vm241_vm8, %v232_v10 }
 0x26c   :  { %v315_v12 = vpop.f32.mrb[0].mxu1 }
 0x26d   :  { %v316_v13 = vadd.f32 %v345_v11, %v315_v12  ;;  %v371_v14 = vpop.f32.mrb[1].mxu1 }
 0x26f   :  { %v348_v15 = vmul.f32 -1.442695, %v316_v13 }
 0x271   :  { %385 = vpow2.f32 %v348_v15 }
 0x27b   :  { %v386_v16 = vpop.eup %385 }
 0x27c   :  { %v322_v17 = vadd.f32 1.0, %v386_v16 }
 0x27e   :  { %387 = vrcp.f32 %v322_v17 }
 0x288   :  { %v388_v18 = vpop.eup %387 }
 0x289   :  { %vm325_vm9 = vcmp.ge.f32.partialorder %v388_v18, 0.3 }
 0x28a   :  { %v326_v19 = vsel %vm325_vm9, %v388_v18, 0.0 }
 0x28b   :  { %327 = vst.msk [vmem:[#allocation6] sm:$0x3] %vm39_vm0, %v326_v19 }
 0x28c   :  { %422 = shalt.err (!%p419_p12)
}
 0x28d   :  { %s423_s21 = scalar_lea.hbm %s527_s5, 32 }
 0x28e   :  { %p424_p13 = scmp.ne.s32.totalorder %s527_s5, %s423_s21  ;;  %p427_p0 = scmp.lt.u32.totalorder %s423_s21, %s527_s5 }
 0x290   :  { %p429_p1 = pnand %p427_p0, %p424_p13 }
 0x292   :  { %432 = shalt.err (!%p429_p1)
}
 0x293   :  { %337 = dma.vmem_to_hbm [thread:$0]  %s335_s2, 32, %s527_s5, [#allocation5]  }
 0x294   :  { %435 = dma.done.wait [#allocation5], 32  }
 0x295   :  { %436 = vsyncadd [#allocation5], 4294967264 }
 0x296   :  { %341 = vsyncpa [#allocation4], 1 }
 0x297   :  { %342 = vsyncpa [#allocation5], 1 }

</bundles_post_ra>
